<compile_context>
chip_gen: v6e
topology: v6e:2x2x1
jax: 0.10.0
libtpu: 0.0.40
codegen_flags: <defaults>
</compile_context>

<pallas_src>
import functools

import numpy as np
import jax
import jax.numpy as jnp
from jax import lax
from jax.experimental import pallas as pl
from jax.experimental.pallas import tpu as pltpu


def make_textcnn_kernel(Lp, TB, kmax, cin, c_tot):
    """Fused conv + global-max-pool + linear kernel body for a fixed config."""
    M = TB * Lp
    pad_rows = 0 if kmax == 1 else ((kmax - 1 + 7) // 8) * 8

    def kernel(x_ref, wall_ref, mask_ref, wlin_ref, blin_ref, out_ref):
        feats = x_ref[...]                                   # (M, cin) bf16

        # Append a few aligned zero rows so every tap's sublane-shifted slice
        # stays in-bounds (shifted-in rows only land on masked positions).
        if pad_rows:
            fpad = jnp.concatenate(
                [feats, jnp.zeros((pad_rows, cin), feats.dtype)], axis=0)
        else:
            fpad = feats

        # Per-tap accumulation: kmax small (K=cin) MXU passes with f32
        # accumulation; no (M, kmax*cin) im2col materialization, no lane
        # packing.  Short convs were tap-padded with zero weights, so their
        # extra taps contribute exactly zero.
        acc = jnp.zeros((M, c_tot), jnp.float32)
        for dk in range(kmax):
            acc = acc + jnp.dot(fpad[dk:dk + M, :], wall_ref[dk],
                                preferred_element_type=jnp.float32)

        # Precomputed additive 0 / -inf validity mask (per position & conv
        # group), then one aligned reshape + a single cross-sublane max per
        # batch row.  Conv bias was folded into the linear bias offline.
        masked = acc + mask_ref[...]
        pooled = jnp.max(masked.reshape(TB, Lp, c_tot), axis=1)   # (TB, c_tot)

        # TODO(synk): functional.dropout(p=0.7) is stochastic; treated as
        # identity (eval-mode semantics).

        logits = jnp.dot(pooled, wlin_ref[...],
                         preferred_element_type=jnp.float32) + blin_ref[...]
        out_ref[...] = logits.astype(out_ref.dtype)

    return kernel


def prepare_params(params, convs, outputs, compute_dtype=jnp.bfloat16):
    """One-time (outside the jitted forward) weight layout preparation."""
    ks = [k for k, _ in convs]
    cos = [c for _, c in convs]
    assert len(set(cos)) == 1, "torch.cat(dim=2) requires equal out_channels"
    C = cos[0]
    num_convs = len(convs)
    c_tot = sum(cos)
    kmax = max(ks)
    cin = params["conv0_w"].shape[1]

    # Fused conv weight, tap-major (kmax, cin, c_tot); short convs zero-padded
    # to kmax taps.  Conv biases collected for the offline bias fold.
    w_blocks, b_blocks = [], []
    for i, (k, co) in enumerate(convs):
        w = jnp.transpose(params[f"conv{i}_w"], (2, 1, 0))       # (k, cin, co)
        if k < kmax:
            w = jnp.concatenate(
                [w, jnp.zeros((kmax - k, cin, co), w.dtype)], axis=0)
        w_blocks.append(w)
        b_blocks.append(params[f"conv{i}_b"].reshape(1, co))
    w_all = jnp.concatenate(w_blocks, axis=2).astype(compute_dtype)  # (kmax,cin,c_tot)
    b_all = jnp.concatenate(b_blocks, axis=1).astype(jnp.float32)    # (1, c_tot)

    # torch flattens cat(dim=2).view as column j = channel*num_convs + conv_i;
    # the kernel's pooled features are conv-major (p = conv_i*C + channel).
    perm = np.array([(p % C) * num_convs + (p // C) for p in range(c_tot)],
                    dtype=np.int32)
    wlin = params["linear_w"].astype(jnp.float32)[:, perm].T         # (c_tot, outputs)
    blin = params["linear_b"].reshape(1, outputs).astype(jnp.float32)
    # Fold the conv bias into the linear bias (exact in f32):
    #   (pooled + b) @ W + blin == pooled @ W + (b @ W + blin)
    blin_eff = b_all @ wlin + blin                                   # (1, outputs)

    return {
        "emb2": jnp.concatenate(
            [params["embedding"], params["embedding_const"]],
            axis=1).astype(compute_dtype),                           # (vocab, 2E)
        "w_all": w_all,
        "wlin": wlin,
        "blin": blin_eff,
    }


def _num_tensorcores():
    """1 TensorCore on v5e/v6e; 2 on megacore (v4/v5p) and v7x."""
    try:
        kind = jax.devices()[0].device_kind.lower()
    except Exception:
        return 1
    if "lite" in kind or "v5e" in kind or "v6e" in kind:
        return 1
    return 2


def _choose_tb(B, num_cores):
    """Rows per grid step: (8,128) sublane rules + core-count-aware step count."""
    cand = [tb for tb in range(1, B + 1)
            if B % tb == 0 and (tb % 8 == 0 or tb == B)]
    if num_cores <= 1:
        return max(cand)                       # single step: no per-step overhead
    good = [tb for tb in cand if (B // tb) % num_cores == 0]
    return max(good) if good else max(cand)


def _build_mask(TB, Lp, L, convs):
    """Additive 0 / -inf f32 mask: position p valid for conv i iff p < L-k_i+1."""
    c_tot = sum(c for _, c in convs)
    m = np.full((Lp, c_tot), -np.inf, dtype=np.float32)
    off = 0
    for k, co in convs:
        m[: L - k + 1, off:off + co] = 0.0
        off += co
    return np.tile(m, (TB, 1))                 # (TB*Lp, c_tot)


def textcnn_forward(token_ids, prep, convs, outputs):
    """Forward pass matching TextCnn.forward (dropout as identity)."""
    B, L = token_ids.shape
    two_e = prep["emb2"].shape[1]
    cin = prep["w_all"].shape[1]
    assert cin == two_e
    ks = [k for k, _ in convs]
    kmax = max(ks)
    assert L >= kmax, "sequence shorter than the largest conv kernel"
    c_tot = sum(c for _, c in convs)
    Lp = ((L + 7) // 8) * 8                    # sublane-aligned padded length
    TB = _choose_tb(B, _num_tensorcores())

    # Single gather from the pre-concatenated embedding table; pad each row to
    # Lp and fold the batch into the MXU M dimension.
    e = prep["emb2"][token_ids]                # (B, L, 2E) bf16
    if Lp > L:
        e = jnp.pad(e, ((0, 0), (0, Lp - L), (0, 0)))
    x = e.reshape(B * Lp, two_e)

    mask = jnp.asarray(_build_mask(TB, Lp, L, convs))     # (TB*Lp, c_tot) f32

    kernel = make_textcnn_kernel(Lp, TB, kmax, cin, c_tot)

    out = pl.pallas_call(
        kernel,
        out_shape=jax.ShapeDtypeStruct((B, outputs), jnp.float32),
        grid=(B // TB,),
        in_specs=[
            pl.BlockSpec((TB * Lp, two_e), lambda b: (b, 0)),
            # Weights / mask: constant index maps -> same block revisited
            # across grid steps, no per-step re-DMA.
            pl.BlockSpec((kmax, cin, c_tot), lambda b: (0, 0, 0)),
            pl.BlockSpec((TB * Lp, c_tot), lambda b: (0, 0)),
            pl.BlockSpec((c_tot, outputs), lambda b: (0, 0)),
            pl.BlockSpec((1, outputs), lambda b: (0, 0)),
        ],
        out_specs=pl.BlockSpec((TB, outputs), lambda b: (b, 0)),
        compiler_params=pltpu.CompilerParams(
            dimension_semantics=("parallel",)),
    )(x, prep["w_all"], mask, prep["wlin"], prep["blin"])
    return out


def textcnn_reference(token_ids, params, convs, outputs):
    """Pure-JAX f32 reference mirroring the PyTorch forward (dropout = id)."""
    emb = params["embedding"][token_ids]
    emb_c = params["embedding_const"][token_ids]
    x = jnp.concatenate([emb, emb_c], axis=-1).astype(jnp.float32)  # (B, L, 2E)
    xt = jnp.transpose(x, (0, 2, 1))                                # (B, 2E, L)
    pooled = []
    for i, (k, co) in enumerate(convs):
        w = params[f"conv{i}_w"].astype(jnp.float32)                # (co, cin, k)
        b = params[f"conv{i}_b"].astype(jnp.float32)
        y = lax.conv_general_dilated(
            xt, w, window_strides=(1,), padding="VALID",
            dimension_numbers=("NCH", "OIH", "NCH"))
        y = y + b[None, :, None]
        pooled.append(jnp.max(y, axis=2, keepdims=True))            # (B, co, 1)
    cat = jnp.concatenate(pooled, axis=2)                           # (B, C, n_convs)
    flat = cat.reshape(-1, sum(c for _, c in convs))
    return flat @ params["linear_w"].T.astype(jnp.float32) + params["linear_b"]


def init_params(key, embedding_count, embedding_size, convs, outputs):
    total = sum(c for _, c in convs)
    keys = jax.random.split(key, 4 + 2 * len(convs))
    params = {
        "embedding": jax.random.normal(
            keys[0], (embedding_count, embedding_size), jnp.float32),
        "embedding_const": jax.random.normal(
            keys[1], (embedding_count, embedding_size), jnp.float32),
        "linear_w": 0.1 * jax.random.normal(
            keys[2], (outputs, total), jnp.float32),
        "linear_b": 0.1 * jax.random.normal(keys[3], (outputs,), jnp.float32),
    }
    cin = 2 * embedding_size
    for i, (k, co) in enumerate(convs):
        params[f"conv{i}_w"] = 0.1 * jax.random.normal(
            keys[4 + 2 * i], (co, cin, k), jnp.float32)
        params[f"conv{i}_b"] = 0.1 * jax.random.normal(
            keys[5 + 2 * i], (co,), jnp.float32)
    return params


if __name__ == "__main__":
    embedding_count = 50
    embedding_size = 16                    # conv in_channels = 32
    convs = [(3, 8), (4, 8), (5, 8)]       # equal out_channels (cat(dim=2))
    outputs = 4
    B, L = 16, 12

    key = jax.random.PRNGKey(0)
    kp, kx = jax.random.split(key)
    params = init_params(kp, embedding_count, embedding_size, convs, outputs)
    token_ids = jax.random.randint(kx, (B, L), 0, embedding_count, jnp.int32)

    prep = prepare_params(params, convs, outputs)          # one-time weight prep
    fwd = jax.jit(functools.partial(textcnn_forward, convs=tuple(convs),
                                    outputs=outputs))
    out = jax.block_until_ready(fwd(token_ids, prep))

    ref = textcnn_reference(token_ids, params, convs, outputs)
    assert out.shape == (B, outputs)
    # bf16 operands (f32 accumulation) vs. the f32 reference -> loose tolerance.
    assert jnp.allclose(out, ref, atol=5e-2, rtol=5e-2), (out, ref)

    print("KERNEL_OK")
</pallas_src>

<mosaic_0001>
module attributes {stable_mosaic.version = 11 : i64} {
  func.func @kernel(%arg0: i32, %arg1: memref<128x32xbf16, #tpu.memory_space<vmem>>, %arg2: memref<5x32x24xbf16, #tpu.memory_space<vmem>>, %arg3: memref<128x24xf32, #tpu.memory_space<vmem>>, %arg4: memref<24x4xf32, #tpu.memory_space<vmem>>, %arg5: memref<1x4xf32, #tpu.memory_space<vmem>>, %arg6: memref<8x4xf32, #tpu.memory_space<vmem>>) attributes {dimension_semantics = [#tpu.dimension_semantics<parallel>], iteration_bounds = array<i64: 2>, scalar_prefetch = 0 : i64, scratch_operands = 0 : i64, tpu.core_type = #tpu.core_type<tc>, window_params = [{transform_indices = @transform_0, window_bounds = array<i64: 128, 32>}, {pipeline_mode = #tpu.pipeline_mode<synchronous>, transform_indices = @transform_1, window_bounds = array<i64: 5, 32, 24>}, {pipeline_mode = #tpu.pipeline_mode<synchronous>, transform_indices = @transform_2, window_bounds = array<i64: 128, 24>}, {pipeline_mode = #tpu.pipeline_mode<synchronous>, transform_indices = @transform_3, window_bounds = array<i64: 24, 4>}, {pipeline_mode = #tpu.pipeline_mode<synchronous>, transform_indices = @transform_4, window_bounds = array<i64: 1, 4>}, {transform_indices = @transform_5, window_bounds = array<i64: 8, 4>}]} {
    %c0 = arith.constant 0 : index
    %c0_0 = arith.constant 0 : index
    %0 = vector.load %arg1[%c0, %c0_0] : memref<128x32xbf16, #tpu.memory_space<vmem>>, vector<128x32xbf16>
    %cst = arith.constant 0.000000e+00 : bf16
    %1 = vector.broadcast %cst : bf16 to vector<8x32xbf16>
    %2 = tpu.concatenate %0, %1 in 0 : vector<128x32xbf16>, vector<8x32xbf16> -> vector<136x32xbf16>
    %cst_1 = arith.constant 0.000000e+00 : f32
    %3 = vector.broadcast %cst_1 : f32 to vector<128x24xf32>
    %4 = vector.extract_strided_slice %2 {offsets = [0, 0], sizes = [128, 32], strides = [1, 1]} : vector<136x32xbf16> to vector<128x32xbf16>
    %c0_2 = arith.constant 0 : index
    %c0_3 = arith.constant 0 : index
    %c0_4 = arith.constant 0 : index
    %5 = vector.load %arg2[%c0_2, %c0_3, %c0_4] : memref<5x32x24xbf16, #tpu.memory_space<vmem>>, vector<1x32x24xbf16>
    %6 = vector.shape_cast %5 : vector<1x32x24xbf16> to vector<32x24xbf16>
    %cst_5 = arith.constant dense<0.000000e+00> : vector<128x24xf32>
    %7 = tpu.matmul %4, %6, %cst_5 {dimension_numbers = #tpu.dot_dimension_numbers<[1], [0], [0], [1], [0, 0, 1, 1], [], []>} : vector<128x32xbf16>, vector<32x24xbf16>, vector<128x24xf32> -> vector<128x24xf32>
    %8 = arith.addf %3, %7 : vector<128x24xf32>
    %9 = vector.extract_strided_slice %2 {offsets = [1, 0], sizes = [128, 32], strides = [1, 1]} : vector<136x32xbf16> to vector<128x32xbf16>
    %c1 = arith.constant 1 : index
    %c0_6 = arith.constant 0 : index
    %c0_7 = arith.constant 0 : index
    %10 = vector.load %arg2[%c1, %c0_6, %c0_7] : memref<5x32x24xbf16, #tpu.memory_space<vmem>>, vector<1x32x24xbf16>
    %11 = vector.shape_cast %10 : vector<1x32x24xbf16> to vector<32x24xbf16>
    %cst_8 = arith.constant dense<0.000000e+00> : vector<128x24xf32>
    %12 = tpu.matmul %9, %11, %cst_8 {dimension_numbers = #tpu.dot_dimension_numbers<[1], [0], [0], [1], [0, 0, 1, 1], [], []>} : vector<128x32xbf16>, vector<32x24xbf16>, vector<128x24xf32> -> vector<128x24xf32>
    %13 = arith.addf %8, %12 : vector<128x24xf32>
    %14 = vector.extract_strided_slice %2 {offsets = [2, 0], sizes = [128, 32], strides = [1, 1]} : vector<136x32xbf16> to vector<128x32xbf16>
    %c2 = arith.constant 2 : index
    %c0_9 = arith.constant 0 : index
    %c0_10 = arith.constant 0 : index
    %15 = vector.load %arg2[%c2, %c0_9, %c0_10] : memref<5x32x24xbf16, #tpu.memory_space<vmem>>, vector<1x32x24xbf16>
    %16 = vector.shape_cast %15 : vector<1x32x24xbf16> to vector<32x24xbf16>
    %cst_11 = arith.constant dense<0.000000e+00> : vector<128x24xf32>
    %17 = tpu.matmul %14, %16, %cst_11 {dimension_numbers = #tpu.dot_dimension_numbers<[1], [0], [0], [1], [0, 0, 1, 1], [], []>} : vector<128x32xbf16>, vector<32x24xbf16>, vector<128x24xf32> -> vector<128x24xf32>
    %18 = arith.addf %13, %17 : vector<128x24xf32>
    %19 = vector.extract_strided_slice %2 {offsets = [3, 0], sizes = [128, 32], strides = [1, 1]} : vector<136x32xbf16> to vector<128x32xbf16>
    %c3 = arith.constant 3 : index
    %c0_12 = arith.constant 0 : index
    %c0_13 = arith.constant 0 : index
    %20 = vector.load %arg2[%c3, %c0_12, %c0_13] : memref<5x32x24xbf16, #tpu.memory_space<vmem>>, vector<1x32x24xbf16>
    %21 = vector.shape_cast %20 : vector<1x32x24xbf16> to vector<32x24xbf16>
    %cst_14 = arith.constant dense<0.000000e+00> : vector<128x24xf32>
    %22 = tpu.matmul %19, %21, %cst_14 {dimension_numbers = #tpu.dot_dimension_numbers<[1], [0], [0], [1], [0, 0, 1, 1], [], []>} : vector<128x32xbf16>, vector<32x24xbf16>, vector<128x24xf32> -> vector<128x24xf32>
    %23 = arith.addf %18, %22 : vector<128x24xf32>
    %24 = vector.extract_strided_slice %2 {offsets = [4, 0], sizes = [128, 32], strides = [1, 1]} : vector<136x32xbf16> to vector<128x32xbf16>
    %c4 = arith.constant 4 : index
    %c0_15 = arith.constant 0 : index
    %c0_16 = arith.constant 0 : index
    %25 = vector.load %arg2[%c4, %c0_15, %c0_16] : memref<5x32x24xbf16, #tpu.memory_space<vmem>>, vector<1x32x24xbf16>
    %26 = vector.shape_cast %25 : vector<1x32x24xbf16> to vector<32x24xbf16>
    %cst_17 = arith.constant dense<0.000000e+00> : vector<128x24xf32>
    %27 = tpu.matmul %24, %26, %cst_17 {dimension_numbers = #tpu.dot_dimension_numbers<[1], [0], [0], [1], [0, 0, 1, 1], [], []>} : vector<128x32xbf16>, vector<32x24xbf16>, vector<128x24xf32> -> vector<128x24xf32>
    %28 = arith.addf %23, %27 : vector<128x24xf32>
    %c0_18 = arith.constant 0 : index
    %c0_19 = arith.constant 0 : index
    %29 = vector.load %arg3[%c0_18, %c0_19] : memref<128x24xf32, #tpu.memory_space<vmem>>, vector<128x24xf32>
    %30 = arith.addf %28, %29 : vector<128x24xf32>
    %31 = vector.shape_cast %30 : vector<128x24xf32> to vector<8x16x24xf32>
    %cst_20 = arith.constant dense<0xFF800000> : vector<8x24xf32>
    %32 = vector.multi_reduction <maximumf>, %31, %cst_20 [1] : vector<8x16x24xf32> to vector<8x24xf32>
    %c0_21 = arith.constant 0 : index
    %c0_22 = arith.constant 0 : index
    %33 = vector.load %arg4[%c0_21, %c0_22] : memref<24x4xf32, #tpu.memory_space<vmem>>, vector<24x4xf32>
    %cst_23 = arith.constant dense<0.000000e+00> : vector<8x4xf32>
    %34 = tpu.matmul %32, %33, %cst_23 {dimension_numbers = #tpu.dot_dimension_numbers<[1], [0], [0], [1], [0, 0, 1, 1], [], []>} : vector<8x24xf32>, vector<24x4xf32>, vector<8x4xf32> -> vector<8x4xf32>
    %c0_24 = arith.constant 0 : index
    %c0_25 = arith.constant 0 : index
    %35 = vector.load %arg5[%c0_24, %c0_25] : memref<1x4xf32, #tpu.memory_space<vmem>>, vector<1x4xf32>
    %36 = vector.broadcast %35 : vector<1x4xf32> to vector<8x4xf32>
    %37 = arith.addf %34, %36 : vector<8x4xf32>
    %c0_26 = arith.constant 0 : index
    %c0_27 = arith.constant 0 : index
    %38 = vector.load %arg6[%c0_26, %c0_27] : memref<8x4xf32, #tpu.memory_space<vmem>>, vector<8x4xf32>
    tpu.vector_store %arg6[%c0_26, %c0_27], %37 {strides = array<i32>} : memref<8x4xf32, #tpu.memory_space<vmem>>, vector<8x4xf32>,
    return
  }
  func.func @transform_0(%arg0: i32) -> (i32, i32) {
    %c0_i32 = arith.constant 0 : i32
    %c0_i32_0 = arith.constant 0 : i32
    return %arg0, %c0_i32 : i32, i32
  }
  func.func @transform_1(%arg0: i32) -> (i32, i32, i32) {
    %c0_i32 = arith.constant 0 : i32
    %c0_i32_0 = arith.constant 0 : i32
    %c0_i32_1 = arith.constant 0 : i32
    %c0_i32_2 = arith.constant 0 : i32
    return %c0_i32, %c0_i32_0, %c0_i32_1 : i32, i32, i32
  }
  func.func @transform_2(%arg0: i32) -> (i32, i32) {
    %c0_i32 = arith.constant 0 : i32
    %c0_i32_0 = arith.constant 0 : i32
    %c0_i32_1 = arith.constant 0 : i32
    return %c0_i32, %c0_i32_0 : i32, i32
  }
  func.func @transform_3(%arg0: i32) -> (i32, i32) {
    %c0_i32 = arith.constant 0 : i32
    %c0_i32_0 = arith.constant 0 : i32
    %c0_i32_1 = arith.constant 0 : i32
    return %c0_i32, %c0_i32_0 : i32, i32
  }
  func.func @transform_4(%arg0: i32) -> (i32, i32) {
    %c0_i32 = arith.constant 0 : i32
    %c0_i32_0 = arith.constant 0 : i32
    %c0_i32_1 = arith.constant 0 : i32
    return %c0_i32, %c0_i32_0 : i32, i32
  }
  func.func @transform_5(%arg0: i32) -> (i32, i32) {
    %c0_i32 = arith.constant 0 : i32
    %c0_i32_0 = arith.constant 0 : i32
    return %arg0, %c0_i32 : i32, i32
  }
}

</mosaic_0001>

<bundles_post_ra>
// kernel: textcnn_forward.1
= control target key start
LH: loop header
LB: loop body
LE: loop exit
PB: predicated region body
PF: predicated region fallthrough
CT: control target
= control target key end

     0   :  { %s1743_s18 = smov 0   ;;  %s2183_s0 = inlined_call_operand.vmem [shape: bf16[256,32], index: 0, kind: input, shape index: {}]   ;;  %s2184_s1 = inlined_call_operand.vmem [shape: bf16[5,32,24], index: 1, kind: input, shape index: {}]   ;;  %s2185_s2 = inlined_call_operand.vmem [shape: f32[128,24], index: 2, kind: input, shape index: {}]   ;;  %s2186_s3 = inlined_call_operand.vmem [shape: f32[24,4], index: 3, kind: input, shape index: {}]   ;;  %s2187_s4 = inlined_call_operand.vmem [shape: f32[1,4], index: 4, kind: input, shape index: {}]   ;;  %s2188_s5 = inlined_call_operand.vmem [shape: f32[16,4], index: 5, kind: output, shape index: {}]  }
   0x1 LB: > { %s1749_s19 = sadd.s32 4294967295, %s1708_s18   ;;  %p1424_p0 = scmp.ge.s32.totalorder %s1708_s18, 1  ;;  %s1708_s18 = sphi %s1743_s18, %s15_s18  }
   0x2   : > { %p188_p1 = scmp.lt.s32.totalorder %s1708_s18, 3 }
   0x4   : > { %p189_p2 = pnand %p1424_p0, %p188_p1 }
   0x6   : > { %192 = sbr.rel (%p189_p2) target bundleno = 522 (0x20a), region = 40 }
   0xb   : > { %v1684_v0 = vld [vmem:[%s2184_s1 + $0x18] sm:$0xff]   ;;  %s1425_s22 = sshll.u32 %s1749_s19, 4  ;;  %v1685_v1 = vld [vmem:[%s2184_s1 + $0x10] sm:$0xff]   ;;  %v1690_v2 = vld [vmem:[%s2184_s1 + $0x28] sm:$0xff]   ;;  %vm291_vm0 = vsmask.f32 7424 }
   0xc   : > { %p216_p3 = scmp.lt.s32.totalorder %s1425_s22, 31  ;;  %1560 = vmatprep.subr.bf16.mxu0 %v1684_v0  ;;  %1669 = vmatprep.subr.bf16.mxu1 %v1684_v0  ;;  %v1692_v3 = vld [vmem:[%s2184_s1 + $0x8] sm:$0xff]   ;;  %vm372_vm1 = vcmask 261120   ;;  %v1710_v24 = vmov 0   ;;  %v1693_v35 = vld [vmem:[%s2184_s1] sm:$0xff]   ;;  %v1698_v51 = vld [vmem:[%s2184_s1 + $0x38] sm:$0xff]  }
   0xd   : > { %1561 = vmatpush3.bf16.msra.mxu0 %v1684_v0  ;;  %1671 = vmatpush3.bf16.msra.mxu1 %v1684_v0  ;;  %v1810_v25 = vrot.slane %v1710_v24, 1  ;;  %v1696_v44 = vld [vmem:[%s2184_s1 + $0x20] sm:$0xff]   ;;  %v1699_v52 = vld [vmem:[%s2184_s1 + $0x48] sm:$0xff]   ;;  %v1700_v56 = vld [vmem:[%s2184_s1 + $0x30] sm:$0xff]   ;;  %vm625_vm2 = vcmask 1046528   ;;  %vm989_vm3 = vcmask 1045504  }
   0xe   : > { %s2198_s22 = smov (!%p216_p3, %s1425_s22), 31  ;;  %1562 = vmatprep.subr.bf16.mxu0 %v1685_v1  ;;  %1670 = vmatprep.subr.bf16.mxu1 %v1685_v1  ;;  %vm797_vm4 = vsmask.f32 6400  ;;  %vm1712_vm5 = vmmov 0   ;;  %vm1188_vm6 = vcmask 195584   ;;  %vm1279_vm7 = vcmask 1041409  }
   0xf   : > { %s1426_s29 = sshll.u32 %s2198_s22, 2  ;;  %vm1281_vm8 = vcmask 1042434   ;;  %vm1283_vm9 = vcmask 1043459   ;;  %vm1285_vm10 = vcmask 1044484   ;;  %vm1287_vm11 = vcmask 1045509   ;;  %p221_p4 = scmp.lt.s32.totalorder %s1749_s19, 1 }
  0x10   : > { %s1769_s7 = scalar_lea.vmem %s2183_s0, %s1426_s29  ;;  %vm1289_vm12 = vcmask 1046534   ;;  %vm1291_vm13 = vcmask 1047559   ;;  %vm1365_vm14 = vcmask 31744  }
  0x11   : > { %1563 = vmatpush3.bf16.msra.mxu0 %v1685_v1  ;;  %1672 = vmatpush3.bf16.msra.mxu1 %v1685_v1  ;;  %v1772_v4 = vld [vmem:[%s1769_s7] sm:$0xff]   ;;  %v1775_v5 = vld [vmem:[%s1769_s7 + $0x8] sm:$0xff]   ;;  %v1782_v10 = vld [vmem:[%s1769_s7 + $0x30] sm:$0xff]   ;;  %s2200_s19 = smov (!%p221_p4, %s1749_s19), 1 }
  0x12   : > { %1600 = vmatprep.subr.bf16.mxu0 %v1690_v2  ;;  %1580 = vmatprep.subr.bf16.mxu1 %v1692_v3  ;;  %v293_v6 = vshrl.u32 %v1772_v4, 16  ;;  %v295_v7 = vshll.u32 %v1772_v4, 16  ;;  %v300_v8 = vshll.u32 %v1775_v5, 16  ;;  %v304_v9 = vshrl.u32 %v1775_v5, 16  ;;  %v1785_v11 = vld [vmem:[%s1769_s7 + $0x38] sm:$0xff]   ;;  %v1796_v18 = vld [vmem:[%s1769_s7 + $0x10] sm:$0xff]  }
  0x13   : > { %v340_v14 = vshll.u32 %v1782_v10, 16  ;;  %v344_v15 = vshrl.u32 %v1782_v10, 16  ;;  %v348_v16 = vshll.u32 %v1785_v11, 16  ;;  %v352_v17 = vshrl.u32 %v1785_v11, 16  ;;  %v1799_v19 = vld [vmem:[%s1769_s7 + $0x18] sm:$0xff]   ;;  %v1817_v30 = vld [vmem:[%s1769_s7 + $0x20] sm:$0xff]  }
  0x14   : > { %v297_v12 = vrot.slane %v295_v7, 1  ;;  %v302_v13 = vrot.slane %v300_v8, 1  ;;  %v308_v27 = vshll.u32 %v1796_v18, 16  ;;  %v312_v28 = vshrl.u32 %v1796_v18, 16  ;;  %v1825_v33 = vld [vmem:[%s1769_s7 + $0x28] sm:$0xff]   ;;  %s1427_s12 = sshll.u32 %s2200_s19, 3 }
  0x15   : > { %v342_v22 = vrot.slane %v340_v14, 1  ;;  %v350_v23 = vrot.slane %v348_v16, 1  ;;  %v316_v29 = vshll.u32 %v1799_v19, 16  ;;  %v320_v37 = vshrl.u32 %v1799_v19, 16  ;;  %s224_s17 = scalar_lea.vmem %s2188_s5, %s1427_s12 }
  0x16   : > { %v298_v20 = vor.u32 %v297_v12, %v293_v6  ;;  %v306_v21 = vor.u32 %v304_v9, %v302_v13  ;;  %v310_v34 = vrot.slane %v308_v27, 1  ;;  %v324_v40 = vshll.u32 %v1817_v30, 16 }
  0x17   : > { %v346_v31 = vor.u32 %v344_v15, %v342_v22  ;;  %v354_v32 = vor.u32 %v352_v17, %v350_v23  ;;  %v318_v36 = vrot.slane %v316_v29, 1  ;;  %v328_v41 = vshrl.u32 %v1817_v30, 16 }
  0x18   : > { %v303_v26 = vsel %vm291_vm0, %v298_v20, %v302_v13  ;;  %v311_v42 = vsel %vm291_vm0, %v306_v21, %v310_v34  ;;  %v314_v43 = vor.u32 %v312_v28, %v310_v34  ;;  %v332_v45 = vshll.u32 %v1825_v33, 16 }
  0x19   : > { %1564 = vmatprep.mubr.msk.bf16.mxu0 %vm372_vm1, %v303_v26  ;;  %v351_v38 = vsel %vm291_vm0, %v346_v31, %v350_v23  ;;  %v359_v39 = vsel %vm291_vm0, %v354_v32, %v1810_v25  ;;  %v326_v46 = vrot.slane %v324_v40, 1  ;;  %v322_v48 = vor.u32 %v320_v37, %v318_v36 }
  0x1a   : > { %1576 = vmatprep.mubr.msk.bf16.mxu1 %vm372_vm1, %v351_v38  ;;  %1565 = vmatmul.mubr.msk.bf16.vlgmr.msra.gmra.mxu0 %vm372_vm1, %v311_v42  ;;  %v319_v47 = vsel %vm291_vm0, %v314_v43, %v318_v36  ;;  %v334_v50 = vrot.slane %v332_v45, 1  ;;  %v336_v54 = vshrl.u32 %v1825_v33, 16  ;;  %v626_v58 = vrot.slane %v1772_v4, 1 }
  0x1b   : > { %1577 = vmatmul.mubr.msk.bf16.vlgmr.msra.gmra.mxu1 %vm372_vm1, %v359_v39  ;;  %1601 = vmatpush3.bf16.msra.mxu0 %v1690_v2  ;;  %v330_v49 = vor.u32 %v328_v41, %v326_v46  ;;  %v327_v53 = vsel %vm291_vm0, %v322_v48, %v326_v46  ;;  %v627_v59 = vrot.slane %v1775_v5, 1  ;;  %v1003_v62 = vrot.slane %v1785_v11, 2 }
  0x1c   : > { %1581 = vmatpush3.bf16.msra.mxu1 %v1692_v3  ;;  %1568 = vmatprep.mubr.msk.bf16.mxu0 %vm372_vm1, %v319_v47  ;;  %v338_v57 = vor.u32 %v336_v54, %v334_v50  ;;  %v1001_v63 = vrot.slane %v1782_v10, 2  ;;  %v629_v0 = vrot.slane %v1796_v18, 1  ;;  %v631_v2 = vrot.slane %v1799_v19, 1 }
  0x1d   : > { %1582 = vmatprep.subr.bf16.mxu1 %v1693_v35  ;;  %1584 = vmatprep.mubr.msk.bf16.mxu1 %vm372_vm1, %v1772_v4  ;;  %v335_v55 = vsel %vm291_vm0, %v330_v49, %v334_v50  ;;  %v628_v61 = vsel %vm625_vm2, %v626_v58, %v627_v59  ;;  %v798_v12 = vrot.slane %v293_v6, 1  ;;  %v802_v13 = vrot.slane %v300_v8, 2 }
  0x1e   : > { %1602 = vmatprep.subr.bf16.mxu0 %v1696_v44  ;;  %v343_v60 = vsel %vm291_vm0, %v338_v57, %v342_v22  ;;  %v1900_v1 = vsel %vm989_vm3, %v1001_v63, %v1003_v62  ;;  %v630_v3 = vsel %vm625_vm2, %v627_v59, %v629_v0  ;;  %v799_v20 = vrot.slane %v295_v7, 2  ;;  %v1701_v22 = vld [vmem:[%s2184_s1 + $0x40] sm:$0xff]  }
  0x1f   : > { %1603 = vmatpush3.bf16.msra.mxu0 %v1696_v44  ;;  %v801_v21 = vrot.slane %v304_v9, 1  ;;  %v632_v23 = vsel %vm625_vm2, %v629_v0, %v631_v2  ;;  %v633_v6 = vrot.slane %v1817_v30, 1  ;;  %v635_v7 = vrot.slane %v1825_v33, 1 }
  0x20   : > { %1583 = vmatpush3.bf16.msra.mxu1 %v1693_v35  ;;  %1640 = vmatprep.subr.bf16.mxu0 %v1699_v52  ;;  %v800_v8 = vor.u32 %v799_v20, %v798_v12  ;;  %v806_v26 = vrot.slane %v308_v27, 2  ;;  %v805_v31 = vrot.slane %v312_v28, 1  ;;  %v809_v36 = vrot.slane %v320_v37, 1  ;;  %v1263_v12 = vld [vmem:[%s2186_s3 + $0x10] sm:$0xff] }
  0x21   : > { %1620 = vmatprep.subr.bf16.mxu1 %v1698_v51  ;;  %v803_v9 = vor.u32 %v802_v13, %v801_v21  ;;  %v634_v32 = vsel %vm625_vm2, %v631_v2, %v633_v6  ;;  %v636_v34 = vsel %vm625_vm2, %v633_v6, %v635_v7  ;;  %v810_v38 = vrot.slane %v316_v29, 2 }
  0x22   : > { %1569 = vmatmul.mubr.msk.bf16.gmra.mxu0 %vm372_vm1, %v327_v53  ;;  %v637_v27 = vrot.slane %v1782_v10, 1  ;;  %v807_v28 = vor.u32 %v806_v26, %v805_v31  ;;  %v639_v39 = vrot.slane %v1785_v11, 1  ;;  %v813_v29 = vrot.slane %v328_v41, 1 }
  0x23   : > { %1585 = vmatmul.mubr.msk.bf16.vlgmr.msra.gmra.mxu1 %vm372_vm1, %v1775_v5  ;;  %1572 = vmatprep.mubr.msk.bf16.mxu0 %vm372_vm1, %v335_v55  ;;  %v804_v35 = vsel %vm797_vm4, %v800_v8, %v803_v9  ;;  %v811_v42 = vor.u32 %v810_v38, %v809_v36  ;;  %v814_v44 = vrot.slane %v324_v40, 2  ;;  %v817_v48 = vrot.slane %v336_v54, 1 }
  0x24   : > { %1588 = vmatprep.mubr.msk.bf16.mxu1 %vm372_vm1, %v1796_v18  ;;  %1621 = vmatpush3.bf16.msra.mxu1 %v1698_v51  ;;  %v638_v37 = vsel %vm625_vm2, %v635_v7, %v637_v27  ;;  %v808_v43 = vsel %vm797_vm4, %v803_v9, %v807_v28  ;;  %v640_v46 = vsel %vm625_vm2, %v637_v27, %v639_v39  ;;  %v818_v49 = vrot.slane %v332_v45, 2 }
  0x25   : > { %1622 = vmatprep.subr.bf16.mxu1 %v1700_v56  ;;  %v812_v47 = vsel %vm797_vm4, %v807_v28, %v811_v42  ;;  %v815_v41 = vor.u32 %v814_v44, %v813_v29  ;;  %v990_v50 = vrot.slane %v1772_v4, 2  ;;  %v991_v51 = vrot.slane %v1775_v5, 2 }
  0x26   : > { %v819_v40 = vor.u32 %v818_v49, %v817_v48  ;;  %v642_v45 = vsel %vm625_vm2, %v639_v39, %v1810_v25  ;;  %v822_v54 = vrot.slane %v340_v14, 2  ;;  %v826_v55 = vrot.slane %v348_v16, 2 }
  0x27   : > { %v816_v53 = vsel %vm797_vm4, %v811_v42, %v815_v41  ;;  %v992_v4 = vsel %vm989_vm3, %v990_v50, %v991_v51  ;;  %v825_v5 = vrot.slane %v352_v17, 1  ;;  %v993_v14 = vrot.slane %v1796_v18, 2 }
  0x28   : > { %1623 = vmatpush3.bf16.msra.mxu1 %v1700_v56  ;;  %v820_v56 = vsel %vm797_vm4, %v815_v41, %v819_v40  ;;  %v995_v16 = vrot.slane %v1799_v19, 2  ;;  %v832_v17 = vrot.slane %v1710_v24, 2  ;;  %v999_v0 = vrot.slane %v1825_v33, 2 }
  0x29   : > { %v827_v57 = vor.u32 %v826_v55, %v825_v5  ;;  %v994_v59 = vsel %vm989_vm3, %v991_v51, %v993_v14 }
  0x2a   : > { %1573 = vmatmul.mubr.msk.bf16.gmra.mxu0 %vm372_vm1, %v343_v60  ;;  %v833_v18 = vor.u32 %v832_v17, %v1810_v25  ;;  %v1002_v25 = vsel %vm989_vm3, %v999_v0, %v1001_v63 }
  0x2b   : > { %1589 = vmatmul.mubr.msk.bf16.gmra.mxu1 %vm372_vm1, %v1799_v19  ;;  %1604 = vmatprep.mubr.msk.bf16.mxu0 %vm372_vm1, %v628_v61  ;;  %v996_v61 = vsel %vm989_vm3, %v993_v14, %v995_v16  ;;  %v997_v19 = vrot.slane %v1817_v30, 2 }
  0x2c   : > { %1592 = vmatprep.mubr.msk.bf16.mxu1 %vm372_vm1, %v1817_v30  ;;  %v834_v24 = vsel %vm797_vm4, %v827_v57, %v833_v18  ;;  %v1006_v30 = vsel %vm989_vm3, %v1003_v62, %v832_v17 }
  0x2d   : > { %v998_v2 = vsel %vm989_vm3, %v995_v16, %v997_v19 }
  0x32   : > { %1605 = vmatmul.mubr.msk.bf16.vlgmr.msra.gmra.mxu0 %vm372_vm1, %v630_v3  ;;  %v1000_v3 = vsel %vm989_vm3, %v997_v19, %v999_v0 }
  0x33   : > { %1593 = vmatmul.mubr.msk.bf16.gmra.mxu1 %vm372_vm1, %v1825_v33  ;;  %1641 = vmatpush3.bf16.msra.mxu0 %v1699_v52  ;;  %v821_v52 = vrot.slane %v344_v15, 1  ;;  %v1711_v33 = vmov 0.0  }
  0x34   : > { %1596 = vmatprep.mubr.msk.bf16.mxu1 %vm372_vm1, %v1782_v10  ;;  %1608 = vmatprep.mubr.msk.bf16.mxu0 %vm372_vm1, %v632_v23  ;;  %v1262_v10 = vld [vmem:[%s2186_s3 + $0x8] sm:$0xff] }
  0x35   : > { %1642 = vmatprep.subr.bf16.mxu0 %v1701_v22  ;;  %v823_v15 = vor.u32 %v822_v54, %v821_v52  ;;  %1660 = vmatprep.subr.mxu1 %v1711_v33 }
  0x37   : > { %1643 = vmatpush3.bf16.msra.mxu0 %v1701_v22  ;;  %v824_v58 = vsel %vm797_vm4, %v819_v40, %v823_v15  ;;  %v828_v60 = vsel %vm797_vm4, %v823_v15, %v827_v57 }
  0x3a   : > { %1609 = vmatmul.mubr.msk.bf16.gmra.mxu0 %vm372_vm1, %v634_v32 }
  0x3b   : > { %1597 = vmatmul.mubr.msk.bf16.gmra.mxu1 %vm372_vm1, %v1785_v11  ;;  %1612 = vmatprep.mubr.msk.bf16.mxu0 %vm372_vm1, %v636_v34  ;;  %v1261_v11 = vld [vmem:[%s2186_s3] sm:$0xff] }
  0x3c   : > { %1624 = vmatprep.mubr.msk.bf16.mxu1 %vm372_vm1, %v804_v35 }
  0x42   : > { %1613 = vmatmul.mubr.msk.bf16.gmra.mxu0 %vm372_vm1, %v638_v37 }
  0x43   : > { %1625 = vmatmul.mubr.msk.bf16.vlgmr.msra.gmra.mxu1 %vm372_vm1, %v808_v43  ;;  %1616 = vmatprep.mubr.msk.bf16.mxu0 %vm372_vm1, %v640_v46 }
  0x44   : > { %1628 = vmatprep.mubr.msk.bf16.mxu1 %vm372_vm1, %v812_v47  ;;  %1661 = vmatpush3.msra.mxu1 %v1263_v12 }
  0x45   : > { %1662 = vmatprep.subr.mxu1 %v1711_v33 }
  0x46   : > { %1663 = vmatpush3.msra.mxu1 %v1262_v10 }
  0x47   : > { %1664 = vmatprep.subr.mxu1 %v1711_v33 }
  0x48   : > { %1665 = vmatpush3.msra.mxu1 %v1261_v11 }
  0x4a   : > { %1617 = vmatmul.mubr.msk.bf16.gmra.mxu0 %vm372_vm1, %v642_v45 }
  0x4b   : > { %1629 = vmatmul.mubr.msk.bf16.gmra.mxu1 %vm372_vm1, %v816_v53  ;;  %1644 = vmatprep.mubr.msk.bf16.mxu0 %vm372_vm1, %v992_v4 }
  0x4c   : > { %1632 = vmatprep.mubr.msk.bf16.mxu1 %vm372_vm1, %v820_v56 }
  0x52   : > { %1645 = vmatmul.mubr.msk.bf16.vlgmr.msra.gmra.mxu0 %vm372_vm1, %v994_v59 }
  0x53   : > { %1633 = vmatmul.mubr.msk.bf16.gmra.mxu1 %vm372_vm1, %v824_v58  ;;  %1648 = vmatprep.mubr.msk.bf16.mxu0 %vm372_vm1, %v996_v61 }
  0x54   : > { %1636 = vmatprep.mubr.msk.bf16.mxu1 %vm372_vm1, %v828_v60 }
  0x5a   : > { %1649 = vmatmul.mubr.msk.bf16.gmra.mxu0 %vm372_vm1, %v998_v2 }
  0x5b   : > { %1637 = vmatmul.mubr.msk.bf16.gmra.mxu1 %vm372_vm1, %v834_v24  ;;  %1652 = vmatprep.mubr.msk.bf16.mxu0 %vm372_vm1, %v1000_v3 }
  0x5c   : > { %1666 = vmatprep.mubr.msk.f32.mxu1 %vm1712_vm5, %v1711_v33 }
  0x62   : > { %1653 = vmatmul.mubr.msk.bf16.gmra.mxu0 %vm372_vm1, %v1002_v25 }
  0x63   : > { %1656 = vmatprep.mubr.msk.bf16.mxu0 %vm372_vm1, %v1900_v1 }
  0x6a   : > { %1657 = vmatmul.mubr.msk.bf16.gmra.mxu0 %vm372_vm1, %v1006_v30 }
  0xda   : > { %v1566_v62 = vpop.f32.mrf.mxu0 }
  0xdb   : > { %v2016_v63 = vpop.f32.mrf.mxu1 }
  0xdc   : > { %v431_v1 = vpop.f32.mrf.mxu0 }
  0xdd   : > { %v2018_v13 = vpop.f32.mrf.mxu1 }
  0xde   : > { %v1567_v20 = vpop.f32.mrf.mxu0 }
  0xdf   : > { %v2020_v21 = vpop.f32.mrf.mxu1 }
  0xe0   : > { %v434_v22 = vpop.f32.mrf.mxu0 }
  0xe1   : > { %v2022_v23 = vpop.f32.mrf.mxu1 }
  0xe2   : > { %v2024_v6 = vpop.f32.mrf.mxu0 }
  0xe3   : > { %v1586_v7 = vpop.f32.mrf.mxu1 }
  0xe4   : > { %v2026_v8 = vpop.f32.mrf.mxu0  ;;  %v565_v18 = vadd.f32 %v1586_v7, %v1566_v62  ;;  %v1158_v62 = vld [vmem:[%s2185_s2 + $0x10] sm:$0xff] }
  0xe5   : > { %v556_v9 = vpop.f32.mrf.mxu1 }
  0xe6   : > { %v2028_v26 = vpop.f32.mrf.mxu0  ;;  %v557_v24 = vadd.f32 %v556_v9, %v431_v1 }
  0xe7   : > { %v1587_v31 = vpop.f32.mrf.mxu1 }
  0xe8   : > { %v2030_v32 = vpop.f32.mrf.mxu0  ;;  %v568_v30 = vadd.f32 %v1587_v31, %v1567_v20 }
  0xe9   : > { %v559_v34 = vpop.f32.mrf.mxu1 }
  0xea   : > { %v2032_v35 = vpop.f32.mrf.mxu0 }
  0xeb   : > { %v1590_v36 = vpop.f32.mrf.mxu1 }
  0xec   : > { %v2034_v38 = vpop.f32.mrf.mxu0  ;;  %v581_v9 = vadd.f32 %v1590_v36, %v2024_v6  ;;  %v1159_v6 = vld [vmem:[%s2185_s2 + $0x18] sm:$0xff] }
  0xed   : > { %v572_v27 = vpop.f32.mrf.mxu1 }
  0xee   : > { %v2036_v28 = vpop.f32.mrf.mxu0 }
  0xef   : > { %v1591_v39 = vpop.f32.mrf.mxu1 }
  0xf0   : > { %v2038_v42 = vpop.f32.mrf.mxu0 }
  0xf1   : > { %v575_v37 = vpop.f32.mrf.mxu1 }
  0xf2   : > { %v1606_v29 = vpop.f32.mrf.mxu0 }
  0xf3   : > { %v1594_v43 = vpop.f32.mrf.mxu1  ;;  %v778_v2 = vadd.f32 %v1606_v29, %v565_v18 }
  0xf4   : > { %v713_v46 = vpop.f32.mrf.mxu0 }
  0xf5   : > { %v588_v44 = vpop.f32.mrf.mxu1  ;;  %v776_v33 = vadd.f32 %v713_v46, %v557_v24  ;;  %v573_v46 = vadd.f32 %v572_v27, %v2026_v8 }
  0xf6   : > { %v1607_v48 = vpop.f32.mrf.mxu0  ;;  %v589_v8 = vadd.f32 %v588_v44, %v2034_v38 }
  0xf7   : > { %v1595_v47 = vpop.f32.mrf.mxu1 }
  0xf8   : > { %v716_v41 = vpop.f32.mrf.mxu0 }
  0xf9   : > { %v591_v49 = vpop.f32.mrf.mxu1 }
  0xfa   : > { %v1610_v50 = vpop.f32.mrf.mxu0 }
  0xfb   : > { %v2040_v40 = vpop.f32.mrf.mxu1  ;;  %v782_v36 = vadd.f32 %v1610_v50, %v581_v9 }
  0xfc   : > { %v729_v52 = vpop.f32.mrf.mxu0 }
  0xfd   : > { %v2042_v51 = vpop.f32.mrf.mxu1 }
  0xfe   : > { %v2046_v53 = vpop.f32.mrf.mxu0  ;;  %v605_v38 = vadd.f32 %v2042_v51, %v2018_v13  ;;  %v1162_v51 = vld [vmem:[%s2185_s2 + $0x30] sm:$0xff] }
  0xff   : > { %v2044_v45 = vpop.f32.mrf.mxu1 }
 0x100   : > { %v2050_v55 = vpop.f32.mrf.mxu0 }
 0x101   : > { %v2048_v54 = vpop.f32.mrf.mxu1 }
 0x102   : > { %v2052_v56 = vpop.f32.mrf.mxu0  ;;  %v608_v18 = vadd.f32 %v2048_v54, %v2022_v23 }
 0x103   : > { %v1626_v4 = vpop.f32.mrf.mxu1 }
 0x104   : > { %v2054_v5 = vpop.f32.mrf.mxu0  ;;  %v970_v12 = vadd.f32 %v1626_v4, %v778_v2  ;;  %v1156_v4 = vld [vmem:[%s2185_s2] sm:$0xff] }
 0x105   : > { %v905_v15 = vpop.f32.mrf.mxu1 }
 0x106   : > { %v2056_v14 = vpop.f32.mrf.mxu0 }
 0x107   : > { %2189 = vst [vmem:[#allocation2_spill] sm:$0xff] %v2056_v14  ;;  %v1627_v57 = vpop.f32.mrf.mxu1 }
 0x108   : > { %v2058_v16 = vpop.f32.mrf.mxu0 }
 0x109   : > { %2190 = vst [vmem:[#allocation3_spill] sm:$0xff] %v2058_v16  ;;  %v908_v58 = vpop.f32.mrf.mxu1  ;;  %v779_v16 = vadd.f32 %v1607_v48, %v568_v30  ;;  %v597_v48 = vadd.f32 %v1594_v43, %v2032_v35  ;;  %v780_v35 = vadd.f32 %v729_v52, %v573_v46 }
 0x10a   : > { %v2060_v59 = vpop.f32.mrf.mxu0 }
 0x10b   : > { %2191 = vst [vmem:[#allocation4_spill] sm:$0xff] %v2060_v59  ;;  %v1630_v17 = vpop.f32.mrf.mxu1  ;;  %v560_v59 = vadd.f32 %v559_v34, %v434_v22  ;;  %v971_v31 = vadd.f32 %v1627_v57, %v779_v16  ;;  %v584_v22 = vadd.f32 %v1591_v39, %v2028_v26  ;;  %v576_v34 = vadd.f32 %v575_v37, %v2030_v32  ;;  %v1157_v37 = vld [vmem:[%s2185_s2 + $0x8] sm:$0xff] }
 0x10c   : > { %v2062_v60 = vpop.f32.mrf.mxu0  ;;  %v600_v26 = vadd.f32 %v1595_v47, %v2036_v28  ;;  %v592_v32 = vadd.f32 %v591_v49, %v2038_v42  ;;  %v974_v43 = vadd.f32 %v1630_v17, %v782_v36  ;;  %v616_v17 = vadd.f32 %v2044_v45, %v2020_v21 }
 0x10d   : > { %2192 = vst [vmem:[#allocation5_spill] sm:$0xff] %v2062_v60  ;;  %v921_v61 = vpop.f32.mrf.mxu1  ;;  %v968_v60 = vadd.f32 %v905_v15, %v776_v33  ;;  %v777_v20 = vadd.f32 %v716_v41, %v560_v59  ;;  %v783_v28 = vadd.f32 %v2046_v53, %v584_v22  ;;  %v786_v21 = vadd.f32 %v2052_v56, %v597_v48  ;;  %v1161_v48 = vld [vmem:[%s2185_s2 + $0x28] sm:$0xff] }
 0x10e   : > { %v2064_v19 = vpop.f32.mrf.mxu0  ;;  %v972_v42 = vadd.f32 %v921_v61, %v780_v35  ;;  %v784_v45 = vadd.f32 %v2054_v5, %v589_v8 }
 0x10f   : > { %v1631_v0 = vpop.f32.mrf.mxu1  ;;  %v969_v41 = vadd.f32 %v908_v58, %v777_v20 }
 0x110   : > { %v2066_v3 = vpop.f32.mrf.mxu0  ;;  %v975_v61 = vadd.f32 %v1631_v0, %v783_v28  ;;  %v1163_v0 = vld [vmem:[%s2185_s2 + $0x38] sm:$0xff]  ;;  %v2194_v56 = vld [vmem:[#allocation3_spill] sm:$0xff] }
 0x111   : > { %v2068_v25 = vpop.f32.mrf.mxu1  ;;  %v785_v20 = vadd.f32 %v2194_v56, %v592_v32 }
 0x112   : > { %v1646_v11 = vpop.f32.mrf.mxu0  ;;  %v2195_v5 = vld [vmem:[#allocation4_spill] sm:$0xff] }
 0x113   : > { %v2070_v10 = vpop.f32.mrf.mxu1  ;;  %v1142_v14 = vadd.f32 %v1646_v11, %v970_v12  ;;  %v2193_v12 = vld [vmem:[#allocation2_spill] sm:$0xff] }
 0x114   : > { %v1077_v7 = vpop.f32.mrf.mxu0  ;;  %v787_v11 = vadd.f32 %v2193_v12, %v600_v26  ;;  %v2196_v36 = vld [vmem:[#allocation5_spill] sm:$0xff] }
 0x115   : > { %v2075_v1 = vpop.f32.mrf.mxu1  ;;  %v1140_v29 = vadd.f32 %v1077_v7, %v968_v60  ;;  %v1174_v57 = vadd.f32 %v1158_v62, %v1142_v14  ;;  %v613_v14 = vadd.f32 %v2040_v40, %v2016_v63  ;;  %v781_v63 = vadd.f32 %v2050_v55, %v576_v34  ;;  %v1160_v55 = vld [vmem:[%s2185_s2 + $0x20] sm:$0xff] }
 0x116   : > { %v1647_v15 = vpop.f32.mrf.mxu0 }
 0x117   : > { %v1143_v16 = vadd.f32 %v1647_v15, %v971_v31  ;;  %v2091_v27 = vpop.f32.mrf.mxu1  ;;  %v1172_v59 = vadd.f32 %v1156_v4, %v1140_v29  ;;  %v1198_v47 = vsel %vm1188_vm6, %v1174_v57, -inf  ;;  %v973_v62 = vadd.f32 %v2068_v25, %v781_v63  ;;  %v1167_v63 = vld [vmem:[%s2185_s2 + $0x58] sm:$0xff] }
 0x118   : > { %v1080_v39 = vpop.f32.mrf.mxu0  ;;  %v790_v31 = vadd.f32 %v2195_v5, %v613_v14  ;;  %v978_v4 = vadd.f32 %v2070_v10, %v786_v21  ;;  %v976_v57 = vadd.f32 %v2075_v1, %v784_v45  ;;  %v1166_v14 = vld [vmem:[%s2185_s2 + $0x50] sm:$0xff] }
 0x119   : > { %v1175_v50 = vadd.f32 %v1159_v6, %v1143_v16  ;;  %v1141_v58 = vadd.f32 %v1080_v39, %v969_v41  ;;  %v940_v13 = vpop.f32.mrf.mxu1  ;;  %v1189_v24 = vsel %vm1188_vm6, %v1172_v59, -inf  ;;  %v788_v41 = vadd.f32 %v2196_v36, %v605_v38 }
 0x11a   : > { %v1650_v44 = vpop.f32.mrf.mxu0  ;;  %v979_v38 = vadd.f32 %v2091_v27, %v787_v11  ;;  %v789_v27 = vadd.f32 %v2066_v3, %v608_v18 }
 0x11b   : > { %v1199_v49 = vsel %vm1188_vm6, %v1175_v50, -inf  ;;  %v1173_v52 = vadd.f32 %v1157_v37, %v1141_v58  ;;  %v1146_v60 = vadd.f32 %v1650_v44, %v974_v43  ;;  %v1638_v22 = vpop.f32.mrf.mxu1  ;;  %v791_v43 = vadd.f32 %v2064_v19, %v616_v17 }
 0x11c   : > { %v1200_v40 = vmax.f32 %v1198_v47, %v1199_v49  ;;  %v1093_v53 = vpop.f32.mrf.mxu0 }
 0x11d   : > { %v1190_v2 = vsel %vm1188_vm6, %v1173_v52, -inf  ;;  %v1144_v30 = vadd.f32 %v1093_v53, %v972_v42  ;;  %v1178_v7 = vadd.f32 %v1162_v51, %v1146_v60  ;;  %v953_v50 = vpop.f32.mrf.mxu1  ;;  %v1164_v60 = vld [vmem:[%s2185_s2 + $0x40] sm:$0xff] }
 0x11e   : > { %v1201_v23 = vrot.slane %v1200_v40, 4  ;;  %v1191_v54 = vmax.f32 %v1189_v24, %v1190_v2  ;;  %v1651_v33 = vpop.f32.mrf.mxu0  ;;  %v982_v24 = vadd.f32 %v1638_v22, %v790_v31  ;;  %v1170_v22 = vld [vmem:[%s2185_s2 + $0x70] sm:$0xff] }
 0x11f   : > { %v1147_v9 = vadd.f32 %v1651_v33, %v975_v61  ;;  %v1176_v15 = vadd.f32 %v1160_v55, %v1144_v30  ;;  %v1216_v32 = vsel %vm1188_vm6, %v1178_v7, -inf  ;;  %v1639_v2 = vpop.f32.mrf.mxu1 }
 0x120   : > { %v1202_v29 = vmax.f32 %v1200_v40, %v1201_v23  ;;  %v1192_v46 = vrot.slane %v1191_v54, 4  ;;  %v1096_v34 = vpop.f32.mrf.mxu0  ;;  %v977_v40 = vadd.f32 %v940_v13, %v785_v20  ;;  %v1165_v23 = vld [vmem:[%s2185_s2 + $0x48] sm:$0xff] }
 0x121   : > { %v1179_v6 = vadd.f32 %v1163_v0, %v1147_v9  ;;  %v1145_v25 = vadd.f32 %v1096_v34, %v973_v62  ;;  %v1207_v28 = vsel %vm1188_vm6, %v1176_v15, -inf  ;;  %v956_v31 = vpop.f32.mrf.mxu1 }
 0x122   : > { %v1203_v16 = vrot.slane %v1202_v29, 2  ;;  %v1193_v8 = vmax.f32 %v1191_v54, %v1192_v46  ;;  %v1654_v26 = vpop.f32.mrf.mxu0  ;;  %v980_v54 = vadd.f32 %v953_v50, %v788_v41 }
 0x123   : > { %v1217_v35 = vsel %vm1188_vm6, %v1179_v6, -inf  ;;  %v1177_v39 = vadd.f32 %v1161_v48, %v1145_v25  ;;  %v1150_v37 = vadd.f32 %v1654_v26, %v978_v4  ;;  %v983_v48 = vadd.f32 %v1639_v2, %v791_v43 }
 0x124   : > { %v1204_v10 = vmax.f32 %v1202_v29, %v1203_v16  ;;  %v1194_v59 = vrot.slane %v1193_v8, 2  ;;  %v1218_v58 = vmax.f32 %v1216_v32, %v1217_v35  ;;  %v1109_v1 = vpop.f32.mrf.mxu0  ;;  %v981_v32 = vadd.f32 %v956_v31, %v789_v27 }
 0x125   : > { %v1208_v42 = vsel %vm1188_vm6, %v1177_v39, -inf  ;;  %v1148_v44 = vadd.f32 %v1109_v1, %v976_v57  ;;  %v1182_v51 = vadd.f32 %v1166_v14, %v1150_v37  ;;  %v1168_v57 = vld [vmem:[%s2185_s2 + $0x60] sm:$0xff] }
 0x126   : > { %v1205_v47 = vrot.slane %v1204_v10, 1  ;;  %v1195_v49 = vmax.f32 %v1193_v8, %v1194_v59  ;;  %v1219_v52 = vrot.slane %v1218_v58, 4  ;;  %v1209_v19 = vmax.f32 %v1207_v28, %v1208_v42  ;;  %v1655_v17 = vpop.f32.mrf.mxu0  ;;  %v1171_v8 = vld [vmem:[%s2185_s2 + $0x78] sm:$0xff]  ;;  %v1169_v59 = vld [vmem:[%s2185_s2 + $0x68] sm:$0xff] }
 0x127   : > { %v1151_v53 = vadd.f32 %v1655_v17, %v979_v38  ;;  %v1180_v55 = vadd.f32 %v1164_v60, %v1148_v44  ;;  %v1234_v62 = vsel %vm1188_vm6, %v1182_v51, -inf }
 0x128   : > { %v1196_v61 = vrot.slane %v1195_v49, 1  ;;  %v1220_v30 = vmax.f32 %v1218_v58, %v1219_v52  ;;  %v1210_v21 = vrot.slane %v1209_v19, 4  ;;  %v1112_v45 = vpop.f32.mrf.mxu0  ;;  %v1206_v12 = vmax.f32 %v1204_v10, %v1205_v47 }
 0x129   : > { %v1183_v33 = vadd.f32 %v1167_v63, %v1151_v53  ;;  %v1149_v0 = vadd.f32 %v1112_v45, %v977_v40  ;;  %v1225_v4 = vsel %vm1188_vm6, %v1180_v55, -inf }
 0x12a   : > { %v1197_v11 = vmax.f32 %v1195_v49, %v1196_v61  ;;  %v1221_v3 = vrot.slane %v1220_v30, 2  ;;  %v1211_v18 = vmax.f32 %v1209_v19, %v1210_v21  ;;  %v1658_v13 = vpop.f32.mrf.mxu0 }
 0x12b   : > { %v1235_v7 = vsel %vm1188_vm6, %v1183_v33, -inf  ;;  %v1181_v9 = vadd.f32 %v1165_v23, %v1149_v0  ;;  %v1154_v56 = vadd.f32 %v1658_v13, %v982_v24 }
 0x12c   : > { %v1280_v20 = vsel %vm1279_vm7, %v1206_v12, %v1197_v11  ;;  %v1222_v5 = vmax.f32 %v1220_v30, %v1221_v3  ;;  %v1212_v29 = vrot.slane %v1211_v18, 2  ;;  %v1236_v46 = vmax.f32 %v1234_v62, %v1235_v7  ;;  %v1125_v34 = vpop.f32.mrf.mxu0 }
 0x12d   : > { %v1226_v15 = vsel %vm1188_vm6, %v1181_v9, -inf  ;;  %v1152_v6 = vadd.f32 %v1125_v34, %v980_v54  ;;  %v1186_v35 = vadd.f32 %v1170_v22, %v1154_v56 }
 0x12e   : > { %v1213_v25 = vmax.f32 %v1211_v18, %v1212_v29  ;;  %v1237_v36 = vrot.slane %v1236_v46, 4  ;;  %v1227_v41 = vmax.f32 %v1225_v4, %v1226_v15  ;;  %v1659_v16 = vpop.f32.mrf.mxu0  ;;  %v1223_v26 = vrot.slane %v1222_v5, 1 }
 0x12f   : > { %v1155_v39 = vadd.f32 %v1659_v16, %v983_v48  ;;  %v1184_v58 = vadd.f32 %v1168_v57, %v1152_v6  ;;  %v1252_v44 = vsel %vm1188_vm6, %v1186_v35, -inf }
 0x130   : > { %v1214_v37 = vrot.slane %v1213_v25, 1  ;;  %v1228_v43 = vrot.slane %v1227_v41, 4  ;;  %v1128_v10 = vpop.f32.mrf.mxu0  ;;  %v1238_v50 = vmax.f32 %v1236_v46, %v1237_v36  ;;  %v1224_v42 = vmax.f32 %v1222_v5, %v1223_v26  ;;  %v1502_v5 = vld [vmem:[%s2187_s4] ss:$0 sm:$0xff] }
 0x131   : > { %v1187_v14 = vadd.f32 %v1171_v8, %v1155_v39  ;;  %v1153_v1 = vadd.f32 %v1128_v10, %v981_v32  ;;  %v1243_v63 = vsel %vm1188_vm6, %v1184_v58, -inf }
 0x132   : > { %v1215_v38 = vmax.f32 %v1213_v25, %v1214_v37  ;;  %v1229_v28 = vmax.f32 %v1227_v41, %v1228_v43  ;;  %v1239_v17 = vrot.slane %v1238_v50, 2 }
 0x133   : > { %v1253_v47 = vsel %vm1188_vm6, %v1187_v14, -inf  ;;  %v1185_v49 = vadd.f32 %v1169_v59, %v1153_v1 }
 0x134   : > { %v1282_v52 = vsel %vm1281_vm8, %v1215_v38, %v1280_v20  ;;  %v1230_v19 = vrot.slane %v1229_v28, 2  ;;  %v1254_v60 = vmax.f32 %v1252_v44, %v1253_v47  ;;  %v1240_v21 = vmax.f32 %v1238_v50, %v1239_v17 }
 0x135   : > { %v1244_v27 = vsel %vm1188_vm6, %v1185_v49, -inf  ;;  %v1284_v40 = vsel %vm1283_vm9, %v1224_v42, %v1282_v52 }
 0x136   : > { %v1231_v51 = vmax.f32 %v1229_v28, %v1230_v19  ;;  %v1255_v53 = vrot.slane %v1254_v60, 4  ;;  %v1245_v61 = vmax.f32 %v1243_v63, %v1244_v27  ;;  %v1241_v0 = vrot.slane %v1240_v21, 1 }
 0x138   : > { %v1232_v24 = vrot.slane %v1231_v51, 1  ;;  %v1256_v2 = vmax.f32 %v1254_v60, %v1255_v53  ;;  %v1246_v30 = vrot.slane %v1245_v61, 4  ;;  %v1242_v13 = vmax.f32 %v1240_v21, %v1241_v0 }
 0x13a   : > { %v1257_v45 = vrot.slane %v1256_v2, 2  ;;  %v1247_v23 = vmax.f32 %v1245_v61, %v1246_v30  ;;  %v1233_v54 = vmax.f32 %v1231_v51, %v1232_v24 }
 0x13c   : > { %v1258_v55 = vmax.f32 %v1256_v2, %v1257_v45  ;;  %v1248_v33 = vrot.slane %v1247_v23, 2  ;;  %v1286_v18 = vsel %vm1285_vm10, %v1233_v54, %v1284_v40 }
 0x13d   : > { %v1288_v9 = vsel %vm1287_vm11, %v1242_v13, %v1286_v18 }
 0x13e   : > { %v1249_v12 = vmax.f32 %v1247_v23, %v1248_v33  ;;  %v1259_v11 = vrot.slane %v1258_v55, 1 }
 0x140   : > { %v1250_v3 = vrot.slane %v1249_v12, 1  ;;  %v1260_v7 = vmax.f32 %v1258_v55, %v1259_v11 }
 0x142   : > { %v1251_v62 = vmax.f32 %v1249_v12, %v1250_v3 }
 0x144   : > { %v1290_v56 = vsel %vm1289_vm12, %v1251_v62, %v1288_v9 }
 0x145   : > { %v1292_v20 = vsel %vm1291_vm13, %v1260_v7, %v1290_v56 }
 0x146   : > { %1667 = vmatmul.mubr.msk.f32.vlgmr.msra.gmra.mxu1 %vm1188_vm6, %v1292_v20 }
 0x206   : > { %v1361_v31 = vpop.f32.mrf.mxu1 }
 0x207   : > { %v1362_v29 = vadd.f32 %v1502_v5, %v1361_v31 }
 0x208   : > { %v1668_v46 = vpop.f32.mrf.mxu1 }
 0x209   : > { %1366 = vst.msk [vmem:[%s224_s17] sm:$0xff] %vm1365_vm14, %v1362_v29 }
 0x20a PF: > { %s15_s18 = sadd.s32 1, %s1708_s18  }
 0x20b   : > { %p12_p5 = scmp.ge.s32.totalorder %s15_s18, 4  }
 0x20d   :  { %14 = sbr.rel (!%p12_p5) target bundleno = 1 (0x1), region = 74 }

</bundles_post_ra>
